<compile_context>
chip_gen: v7x
topology: tpu7x:2x2x1
jax: 0.10.0
libtpu: 0.0.40
codegen_flags: <defaults>
</compile_context>

<pallas_src>
import jax
import jax.numpy as jnp
from jax.experimental import pallas as pl
from jax.experimental.pallas import tpu as pltpu


def ae_kernel(x_ref, eps_ref,
              w1_ref, b1_ref,
              w2mu_ref, b2mu_ref, w2sig_ref, b2sig_ref,
              w3_ref, b3_ref, w4_ref, b4_ref,
              out_ref):
    """Fused AE forward for one batch tile. Weights/x are bf16, activations f32."""
    f32 = jnp.float32
    bf16 = jnp.bfloat16

    x = x_ref[...]                                                  # (TB, D_in) bf16

    # ---- encoder: Linear + ReLU ----
    h = jnp.dot(x, w1_ref[...], preferred_element_type=f32) + b1_ref[...]
    h = jnp.maximum(h, 0.0)

    # ---- encoder heads: mu / log_sig (lane-aligned, no offset-32 slicing) ----
    hb = h.astype(bf16)
    mu = jnp.dot(hb, w2mu_ref[...], preferred_element_type=f32) + b2mu_ref[...]
    log_sig = jnp.dot(hb, w2sig_ref[...], preferred_element_type=f32) + b2sig_ref[...]

    # ---- L2-project mu, reparameterized sample ----
    inv_norm = jax.lax.rsqrt(jnp.sum(mu * mu, axis=1, keepdims=True))  # EUP rsqrt
    mu = mu * inv_norm
    z = mu + jnp.exp(log_sig) * eps_ref[...]                        # (TB, Z) f32

    # ---- decoder: Linear + ReLU -> Linear ----
    h2 = jnp.dot(z.astype(bf16), w3_ref[...],
                 preferred_element_type=f32) + b3_ref[...]
    h2 = jnp.maximum(h2, 0.0)
    out_ref[...] = jnp.dot(h2.astype(bf16), w4_ref[...],
                           preferred_element_type=f32) + b4_ref[...]


def prepare_params(params):
    """One-time param prep: split the mu/log_sig heads and cast weights to bf16."""
    w1, b1, w2, b2, w3, b3, w4, b4 = params
    zdim = w2.shape[1] // 2
    bf16, f32 = jnp.bfloat16, jnp.float32
    return (w1.astype(bf16), b1.astype(f32),
            w2[:, :zdim].astype(bf16), b2[:, :zdim].astype(f32),
            w2[:, zdim:].astype(bf16), b2[:, zdim:].astype(f32),
            w3.astype(bf16), b3.astype(f32),
            w4.astype(bf16), b4.astype(f32))


def _round_up(n, m):
    return ((n + m - 1) // m) * m


def ae_forward(x_nchw, eps, kparams):
    """Flatten NCHW -> fused Pallas kernel over batch tiles -> reshape back to NCHW."""
    B, C, H, W = x_nchw.shape
    d_in = C * H * W
    zdim = eps.shape[1]
    # x feeds only the first dot -> cast to bf16 in the wrapper (halves input DMA).
    x_flat = x_nchw.reshape(B, d_in).astype(jnp.bfloat16)
    eps = eps.astype(jnp.float32)

    # Pad batch to a multiple of 8 (sublane); use 128-row tiles for large batches
    # so the grid can shard across v7x's two TensorCores.
    if B > 128:
        b_pad, tb = _round_up(B, 128), 128
    else:
        b_pad = _round_up(B, 8)
        tb = b_pad
    if b_pad != B:
        pad = b_pad - B
        # edge padding (not zeros) keeps the rsqrt(norm) finite on padded rows
        x_flat = jnp.pad(x_flat, ((0, pad), (0, 0)), mode="edge")
        eps_p = jnp.pad(eps, ((0, pad), (0, 0)), mode="edge")
    else:
        eps_p = eps

    (w1, b1, w2mu, b2mu, w2sig, b2sig, w3, b3, w4, b4) = kparams

    def row_spec(cols):
        return pl.BlockSpec((tb, cols), lambda i: (i, 0))

    def full2d(a):
        # Whole array as one block, constant block index -> stays VMEM-resident
        # across the batch grid (no re-DMA per step).
        return pl.BlockSpec(a.shape, lambda i: (0, 0))

    grid = (b_pad // tb,)

    recon_flat = pl.pallas_call(
        ae_kernel,
        out_shape=jax.ShapeDtypeStruct((b_pad, d_in), jnp.float32),
        grid=grid,
        in_specs=[row_spec(d_in), row_spec(zdim),
                  full2d(w1), full2d(b1),
                  full2d(w2mu), full2d(b2mu), full2d(w2sig), full2d(b2sig),
                  full2d(w3), full2d(b3), full2d(w4), full2d(b4)],
        out_specs=row_spec(d_in),
        compiler_params=pltpu.CompilerParams(
            dimension_semantics=("parallel",)),
    )(x_flat, eps_p, w1, b1, w2mu, b2mu, w2sig, b2sig, w3, b3, w4, b4)

    return recon_flat[:B].reshape(B, C, H, W)


def ae_reference(x_nchw, eps, kparams):
    """Pure-JAX reference with identical bf16/f32 precision choices."""
    B, C, H, W = x_nchw.shape
    x = x_nchw.reshape(B, C * H * W)
    (w1, b1, w2mu, b2mu, w2sig, b2sig, w3, b3, w4, b4) = kparams
    bf16, f32 = jnp.bfloat16, jnp.float32

    def dot(a, w):
        return jax.lax.dot(a.astype(bf16), w, preferred_element_type=f32)

    h = jnp.maximum(dot(x, w1) + b1, 0.0)
    mu = dot(h, w2mu) + b2mu
    log_sig = dot(h, w2sig) + b2sig
    mu = mu / jnp.linalg.norm(mu, axis=1, keepdims=True)
    z = mu + jnp.exp(log_sig) * eps.astype(f32)
    h2 = jnp.maximum(dot(z, w3) + b3, 0.0)
    recon = dot(h2, w4) + b4
    return recon.reshape(B, C, H, W)


if __name__ == "__main__":
    # small shapes consistent with the module's forward
    B, C, H, W = 2, 4, 16, 16          # NCHW input
    D_IN = C * H * W                   # 1024 flattened features
    HID = 128                          # MLP hidden width
    ZDIM = 32                          # latent size; encoder heads output mu, log_sig

    key = jax.random.PRNGKey(0)
    k_x, k_eps, k1, k2, k3, k4 = jax.random.split(key, 6)

    x = jax.random.normal(k_x, (B, C, H, W), dtype=jnp.float32)
    eps = jax.random.normal(k_eps, (B, ZDIM), dtype=jnp.float32)   # replaces torch.randn

    # deterministic parameter init (biases kept 2D (1, n) for TPU-friendly layout)
    w1 = jax.random.normal(k1, (D_IN, HID), dtype=jnp.float32) * 0.02
    b1 = jnp.zeros((1, HID), dtype=jnp.float32)
    w2 = jax.random.normal(k2, (HID, 2 * ZDIM), dtype=jnp.float32) * 0.02
    b2 = jnp.zeros((1, 2 * ZDIM), dtype=jnp.float32)
    w3 = jax.random.normal(k3, (ZDIM, HID), dtype=jnp.float32) * 0.02
    b3 = jnp.zeros((1, HID), dtype=jnp.float32)
    w4 = jax.random.normal(k4, (HID, D_IN), dtype=jnp.float32) * 0.02
    b4 = jnp.zeros((1, D_IN), dtype=jnp.float32)

    kparams = prepare_params((w1, b1, w2, b2, w3, b3, w4, b4))

    recon = ae_forward(x, eps, kparams)
    recon = jax.block_until_ready(recon)

    ref = ae_reference(x, eps, kparams)
    assert recon.shape == (B, C, H, W)
    assert jnp.allclose(recon, ref, atol=5e-3, rtol=5e-3), "mismatch vs reference"

    print("KERNEL_OK")
</pallas_src>

<mosaic_0001>
module attributes {stable_mosaic.version = 11 : i64} {
  func.func @ae_kernel(%arg0: i32, %arg1: memref<8x1024xbf16, #tpu.memory_space<vmem>>, %arg2: memref<8x32xf32, #tpu.memory_space<vmem>>, %arg3: memref<1024x128xbf16, #tpu.memory_space<vmem>>, %arg4: memref<1x128xf32, #tpu.memory_space<vmem>>, %arg5: memref<128x32xbf16, #tpu.memory_space<vmem>>, %arg6: memref<1x32xf32, #tpu.memory_space<vmem>>, %arg7: memref<128x32xbf16, #tpu.memory_space<vmem>>, %arg8: memref<1x32xf32, #tpu.memory_space<vmem>>, %arg9: memref<32x128xbf16, #tpu.memory_space<vmem>>, %arg10: memref<1x128xf32, #tpu.memory_space<vmem>>, %arg11: memref<128x1024xbf16, #tpu.memory_space<vmem>>, %arg12: memref<1x1024xf32, #tpu.memory_space<vmem>>, %arg13: memref<8x1024xf32, #tpu.memory_space<vmem>>) attributes {dimension_semantics = [#tpu.dimension_semantics<parallel>], iteration_bounds = array<i64: 1>, scalar_prefetch = 0 : i64, scratch_operands = 0 : i64, tpu.core_type = #tpu.core_type<tc>, window_params = [{transform_indices = @transform_0, window_bounds = array<i64: 8, 1024>}, {transform_indices = @transform_1, window_bounds = array<i64: 8, 32>}, {pipeline_mode = #tpu.pipeline_mode<synchronous>, transform_indices = @transform_2, window_bounds = array<i64: 1024, 128>}, {pipeline_mode = #tpu.pipeline_mode<synchronous>, transform_indices = @transform_3, window_bounds = array<i64: 1, 128>}, {pipeline_mode = #tpu.pipeline_mode<synchronous>, transform_indices = @transform_4, window_bounds = array<i64: 128, 32>}, {pipeline_mode = #tpu.pipeline_mode<synchronous>, transform_indices = @transform_5, window_bounds = array<i64: 1, 32>}, {pipeline_mode = #tpu.pipeline_mode<synchronous>, transform_indices = @transform_6, window_bounds = array<i64: 128, 32>}, {pipeline_mode = #tpu.pipeline_mode<synchronous>, transform_indices = @transform_7, window_bounds = array<i64: 1, 32>}, {pipeline_mode = #tpu.pipeline_mode<synchronous>, transform_indices = @transform_8, window_bounds = array<i64: 32, 128>}, {pipeline_mode = #tpu.pipeline_mode<synchronous>, transform_indices = @transform_9, window_bounds = array<i64: 1, 128>}, {pipeline_mode = #tpu.pipeline_mode<synchronous>, transform_indices = @transform_10, window_bounds = array<i64: 128, 1024>}, {pipeline_mode = #tpu.pipeline_mode<synchronous>, transform_indices = @transform_11, window_bounds = array<i64: 1, 1024>}, {transform_indices = @transform_12, window_bounds = array<i64: 8, 1024>}]} {
    %c0 = arith.constant 0 : index
    %c0_0 = arith.constant 0 : index
    %0 = vector.load %arg1[%c0, %c0_0] : memref<8x1024xbf16, #tpu.memory_space<vmem>>, vector<8x1024xbf16>
    %c0_1 = arith.constant 0 : index
    %c0_2 = arith.constant 0 : index
    %1 = vector.load %arg3[%c0_1, %c0_2] : memref<1024x128xbf16, #tpu.memory_space<vmem>>, vector<1024x128xbf16>
    %cst = arith.constant dense<0.000000e+00> : vector<8x128xf32>
    %2 = tpu.matmul %0, %1, %cst {dimension_numbers = #tpu.dot_dimension_numbers<[1], [0], [0], [1], [0, 0, 1, 1], [], []>} : vector<8x1024xbf16>, vector<1024x128xbf16>, vector<8x128xf32> -> vector<8x128xf32>
    %c0_3 = arith.constant 0 : index
    %c0_4 = arith.constant 0 : index
    %3 = vector.load %arg4[%c0_3, %c0_4] : memref<1x128xf32, #tpu.memory_space<vmem>>, vector<1x128xf32>
    %4 = vector.broadcast %3 : vector<1x128xf32> to vector<8x128xf32>
    %5 = arith.addf %2, %4 : vector<8x128xf32>
    %cst_5 = arith.constant 0.000000e+00 : f32
    %6 = vector.broadcast %cst_5 : f32 to vector<8x128xf32>
    %7 = arith.maximumf %5, %6 : vector<8x128xf32>
    %8 = arith.truncf %7 : vector<8x128xf32> to vector<8x128xbf16>
    %c0_6 = arith.constant 0 : index
    %c0_7 = arith.constant 0 : index
    %9 = vector.load %arg5[%c0_6, %c0_7] : memref<128x32xbf16, #tpu.memory_space<vmem>>, vector<128x32xbf16>
    %cst_8 = arith.constant dense<0.000000e+00> : vector<8x32xf32>
    %10 = tpu.matmul %8, %9, %cst_8 {dimension_numbers = #tpu.dot_dimension_numbers<[1], [0], [0], [1], [0, 0, 1, 1], [], []>} : vector<8x128xbf16>, vector<128x32xbf16>, vector<8x32xf32> -> vector<8x32xf32>
    %c0_9 = arith.constant 0 : index
    %c0_10 = arith.constant 0 : index
    %11 = vector.load %arg6[%c0_9, %c0_10] : memref<1x32xf32, #tpu.memory_space<vmem>>, vector<1x32xf32>
    %12 = vector.broadcast %11 : vector<1x32xf32> to vector<8x32xf32>
    %13 = arith.addf %10, %12 : vector<8x32xf32>
    %c0_11 = arith.constant 0 : index
    %c0_12 = arith.constant 0 : index
    %14 = vector.load %arg7[%c0_11, %c0_12] : memref<128x32xbf16, #tpu.memory_space<vmem>>, vector<128x32xbf16>
    %cst_13 = arith.constant dense<0.000000e+00> : vector<8x32xf32>
    %15 = tpu.matmul %8, %14, %cst_13 {dimension_numbers = #tpu.dot_dimension_numbers<[1], [0], [0], [1], [0, 0, 1, 1], [], []>} : vector<8x128xbf16>, vector<128x32xbf16>, vector<8x32xf32> -> vector<8x32xf32>
    %c0_14 = arith.constant 0 : index
    %c0_15 = arith.constant 0 : index
    %16 = vector.load %arg8[%c0_14, %c0_15] : memref<1x32xf32, #tpu.memory_space<vmem>>, vector<1x32xf32>
    %17 = vector.broadcast %16 : vector<1x32xf32> to vector<8x32xf32>
    %18 = arith.addf %15, %17 : vector<8x32xf32>
    %19 = arith.mulf %13, %13 : vector<8x32xf32>
    %cst_16 = arith.constant dense<0.000000e+00> : vector<8xf32>
    %20 = vector.multi_reduction <add>, %19, %cst_16 [1] : vector<8x32xf32> to vector<8xf32>
    %21 = vector.shape_cast %20 : vector<8xf32> to vector<8x1xf32>
    %22 = math.rsqrt %21 : vector<8x1xf32>
    %23 = vector.broadcast %22 : vector<8x1xf32> to vector<8x32xf32>
    %24 = arith.mulf %13, %23 : vector<8x32xf32>
    %25 = math.exp %18 : vector<8x32xf32>
    %c0_17 = arith.constant 0 : index
    %c0_18 = arith.constant 0 : index
    %26 = vector.load %arg2[%c0_17, %c0_18] : memref<8x32xf32, #tpu.memory_space<vmem>>, vector<8x32xf32>
    %27 = arith.mulf %25, %26 : vector<8x32xf32>
    %28 = arith.addf %24, %27 : vector<8x32xf32>
    %29 = arith.truncf %28 : vector<8x32xf32> to vector<8x32xbf16>
    %c0_19 = arith.constant 0 : index
    %c0_20 = arith.constant 0 : index
    %30 = vector.load %arg9[%c0_19, %c0_20] : memref<32x128xbf16, #tpu.memory_space<vmem>>, vector<32x128xbf16>
    %cst_21 = arith.constant dense<0.000000e+00> : vector<8x128xf32>
    %31 = tpu.matmul %29, %30, %cst_21 {dimension_numbers = #tpu.dot_dimension_numbers<[1], [0], [0], [1], [0, 0, 1, 1], [], []>} : vector<8x32xbf16>, vector<32x128xbf16>, vector<8x128xf32> -> vector<8x128xf32>
    %c0_22 = arith.constant 0 : index
    %c0_23 = arith.constant 0 : index
    %32 = vector.load %arg10[%c0_22, %c0_23] : memref<1x128xf32, #tpu.memory_space<vmem>>, vector<1x128xf32>
    %33 = vector.broadcast %32 : vector<1x128xf32> to vector<8x128xf32>
    %34 = arith.addf %31, %33 : vector<8x128xf32>
    %cst_24 = arith.constant 0.000000e+00 : f32
    %35 = vector.broadcast %cst_24 : f32 to vector<8x128xf32>
    %36 = arith.maximumf %34, %35 : vector<8x128xf32>
    %37 = arith.truncf %36 : vector<8x128xf32> to vector<8x128xbf16>
    %c0_25 = arith.constant 0 : index
    %c0_26 = arith.constant 0 : index
    %38 = vector.load %arg11[%c0_25, %c0_26] : memref<128x1024xbf16, #tpu.memory_space<vmem>>, vector<128x1024xbf16>
    %cst_27 = arith.constant dense<0.000000e+00> : vector<8x1024xf32>
    %39 = tpu.matmul %37, %38, %cst_27 {dimension_numbers = #tpu.dot_dimension_numbers<[1], [0], [0], [1], [0, 0, 1, 1], [], []>} : vector<8x128xbf16>, vector<128x1024xbf16>, vector<8x1024xf32> -> vector<8x1024xf32>
    %c0_28 = arith.constant 0 : index
    %c0_29 = arith.constant 0 : index
    %40 = vector.load %arg12[%c0_28, %c0_29] : memref<1x1024xf32, #tpu.memory_space<vmem>>, vector<1x1024xf32>
    %41 = vector.broadcast %40 : vector<1x1024xf32> to vector<8x1024xf32>
    %42 = arith.addf %39, %41 : vector<8x1024xf32>
    %c0_30 = arith.constant 0 : index
    %c0_31 = arith.constant 0 : index
    %43 = vector.load %arg13[%c0_30, %c0_31] : memref<8x1024xf32, #tpu.memory_space<vmem>>, vector<8x1024xf32>
    tpu.vector_store %arg13[%c0_30, %c0_31], %42 {strides = array<i32>} : memref<8x1024xf32, #tpu.memory_space<vmem>>, vector<8x1024xf32>,
    return
  }
  func.func @transform_0(%arg0: i32) -> (i32, i32) {
    %c0_i32 = arith.constant 0 : i32
    %c0_i32_0 = arith.constant 0 : i32
    return %arg0, %c0_i32 : i32, i32
  }
  func.func @transform_1(%arg0: i32) -> (i32, i32) {
    %c0_i32 = arith.constant 0 : i32
    %c0_i32_0 = arith.constant 0 : i32
    return %arg0, %c0_i32 : i32, i32
  }
  func.func @transform_2(%arg0: i32) -> (i32, i32) {
    %c0_i32 = arith.constant 0 : i32
    %c0_i32_0 = arith.constant 0 : i32
    %c0_i32_1 = arith.constant 0 : i32
    return %c0_i32, %c0_i32_0 : i32, i32
  }
  func.func @transform_3(%arg0: i32) -> (i32, i32) {
    %c0_i32 = arith.constant 0 : i32
    %c0_i32_0 = arith.constant 0 : i32
    %c0_i32_1 = arith.constant 0 : i32
    return %c0_i32, %c0_i32_0 : i32, i32
  }
  func.func @transform_4(%arg0: i32) -> (i32, i32) {
    %c0_i32 = arith.constant 0 : i32
    %c0_i32_0 = arith.constant 0 : i32
    %c0_i32_1 = arith.constant 0 : i32
    return %c0_i32, %c0_i32_0 : i32, i32
  }
  func.func @transform_5(%arg0: i32) -> (i32, i32) {
    %c0_i32 = arith.constant 0 : i32
    %c0_i32_0 = arith.constant 0 : i32
    %c0_i32_1 = arith.constant 0 : i32
    return %c0_i32, %c0_i32_0 : i32, i32
  }
  func.func @transform_6(%arg0: i32) -> (i32, i32) {
    %c0_i32 = arith.constant 0 : i32
    %c0_i32_0 = arith.constant 0 : i32
    %c0_i32_1 = arith.constant 0 : i32
    return %c0_i32, %c0_i32_0 : i32, i32
  }
  func.func @transform_7(%arg0: i32) -> (i32, i32) {
    %c0_i32 = arith.constant 0 : i32
    %c0_i32_0 = arith.constant 0 : i32
    %c0_i32_1 = arith.constant 0 : i32
    return %c0_i32, %c0_i32_0 : i32, i32
  }
  func.func @transform_8(%arg0: i32) -> (i32, i32) {
    %c0_i32 = arith.constant 0 : i32
    %c0_i32_0 = arith.constant 0 : i32
    %c0_i32_1 = arith.constant 0 : i32
    return %c0_i32, %c0_i32_0 : i32, i32
  }
  func.func @transform_9(%arg0: i32) -> (i32, i32) {
    %c0_i32 = arith.constant 0 : i32
    %c0_i32_0 = arith.constant 0 : i32
    %c0_i32_1 = arith.constant 0 : i32
    return %c0_i32, %c0_i32_0 : i32, i32
  }
  func.func @transform_10(%arg0: i32) -> (i32, i32) {
    %c0_i32 = arith.constant 0 : i32
    %c0_i32_0 = arith.constant 0 : i32
    %c0_i32_1 = arith.constant 0 : i32
    return %c0_i32, %c0_i32_0 : i32, i32
  }
  func.func @transform_11(%arg0: i32) -> (i32, i32) {
    %c0_i32 = arith.constant 0 : i32
    %c0_i32_0 = arith.constant 0 : i32
    %c0_i32_1 = arith.constant 0 : i32
    return %c0_i32, %c0_i32_0 : i32, i32
  }
  func.func @transform_12(%arg0: i32) -> (i32, i32) {
    %c0_i32 = arith.constant 0 : i32
    %c0_i32_0 = arith.constant 0 : i32
    return %arg0, %c0_i32 : i32, i32
  }
}

</mosaic_0001>

<bundles_post_ra>
// kernel: tpu_custom_call.1
= control target key start
LH: loop header
LB: loop body
LE: loop exit
PB: predicated region body
PF: predicated region fallthrough
CT: control target
= control target key end

     0   :  { %17 = vsyncpa [#allocation3], 0  ;;  %s2432_s0 = inlined_call_operand.vmem [shape: bf16[8,1024], index: 0, kind: input, shape index: {}]   ;;  %s2433_s1 = inlined_call_operand.vmem [shape: f32[8,32], index: 1, kind: input, shape index: {}]   ;;  %s2434_s2 = inlined_call_operand.hbm [shape: bf16[1024,128], index: 2, kind: input, shape index: {}]   ;;  %s2435_s3 = inlined_call_operand.vmem [shape: f32[1,128], index: 3, kind: input, shape index: {}]   ;;  %s2436_s4 = inlined_call_operand.vmem [shape: bf16[128,32], index: 4, kind: input, shape index: {}]   ;;  %s2437_s5 = inlined_call_operand.vmem [shape: f32[1,32], index: 5, kind: input, shape index: {}]   ;;  %s2438_s6 = inlined_call_operand.vmem [shape: bf16[128,32], index: 6, kind: input, shape index: {}]   ;;  %s2439_s7 = inlined_call_operand.vmem [shape: f32[1,32], index: 7, kind: input, shape index: {}]   ;;  %s2440_s8 = inlined_call_operand.vmem [shape: bf16[32,128], index: 8, kind: input, shape index: {}]   ;;  %s2441_s9 = inlined_call_operand.vmem [shape: f32[1,128], index: 9, kind: input, shape index: {}]   ;;  %s2442_s10 = inlined_call_operand.hbm [shape: bf16[128,1024], index: 10, kind: input, shape index: {}]   ;;  %s2443_s11 = inlined_call_operand.vmem [shape: f32[1,1024], index: 11, kind: input, shape index: {}]   ;;  %s2444_s12 = inlined_call_operand.hbm [shape: f32[8,1024], index: 12, kind: output, shape index: {}]  }
   0x1   :  { %18 = vsyncpa [#allocation6], 0 }
   0x2   :  { %19 = vsyncpa [#allocation4], 0  ;;  %s2193_s21 = smov [#allocation2]   ;;  %s2121_s25 = scalar_lea.hbm %s2434_s2, 8192 }
   0x3   :  { %s29_s22 = sshll.u32 %s2193_s21, 4  ;;  %p2122_p0 = scmp.ne.s32.totalorder %s2434_s2, %s2121_s25  ;;  %s30_s22 = int_to_ptr.vmem [resolvable:$true] %s29_s22 }
   0x4   :  { %p2125_p1 = scmp.lt.u32.totalorder %s2121_s25, %s2434_s2 }
   0x6   :  { %p2127_p2 = pnand %p2125_p1, %p2122_p0 }
   0x8   :  { %2130 = shalt.err (!%p2127_p2)
}
   0x9   :  { %s2131_s30 = scalar_lea.vmem %s30_s22, 8192  ;;  %p2136_p4 = scmp.lt.s32.totalorder %s30_s22, %s30_s22 }
   0xa   :  { %p2132_p3 = scmp.ne.s32.totalorder %s30_s22, %s2131_s30  ;;  %p2137_p5 = scmp.lt.s32.totalorder %s2131_s30, %s2131_s30 }
   0xc   :  { %p2138_p6 = por %p2137_p5, %p2136_p4 }
   0xe   :  { %p2139_p7 = pnand %p2138_p6, %p2132_p3 }
  0x10   :  { %2142 = shalt.err (!%p2139_p7)
}
  0x11   :  { %s2194_s13 = smov 64   ;;  %s2195_s14 = smov 4  }
  0x12   :  { %35 = dma.hbm_to_vmem [thread:$0]  %s2434_s2, 8192, %s30_s22, [#allocation3], %s2194_s13, %s2194_s13, %s2195_s14  }
  0x13   :  { %s2196_s17 = smov [#allocation5]   ;;  %s2143_s21 = scalar_lea.hbm %s2442_s10, 8192 }
  0x14   :  { %s55_s18 = sshll.u32 %s2196_s17, 4  ;;  %p2144_p8 = scmp.ne.s32.totalorder %s2442_s10, %s2143_s21  ;;  %s56_s18 = int_to_ptr.vmem [resolvable:$true] %s55_s18 }
  0x15   :  { %p2147_p9 = scmp.lt.u32.totalorder %s2143_s21, %s2442_s10 }
  0x17   :  { %p2149_p10 = pnand %p2147_p9, %p2144_p8 }
  0x19   :  { %2152 = shalt.err (!%p2149_p10)
}
  0x1a   :  { %s2153_s27 = scalar_lea.vmem %s56_s18, 8192  ;;  %p2158_p12 = scmp.lt.s32.totalorder %s56_s18, %s56_s18 }
  0x1b   :  { %p2154_p11 = scmp.ne.s32.totalorder %s56_s18, %s2153_s27  ;;  %p2159_p13 = scmp.lt.s32.totalorder %s2153_s27, %s2153_s27 }
  0x1d   :  { %p2160_p0 = por %p2159_p13, %p2158_p12 }
  0x1f   :  { %p2161_p1 = pnand %p2160_p0, %p2154_p11 }
  0x21   :  { %2164 = shalt.err (!%p2161_p1)
}
  0x22   :  { %s2197_s2 = smov 512   ;;  %s2198_s22 = smov 32  }
  0x23   :  { %61 = dma.hbm_to_vmem [thread:$0]  %s2442_s10, 8192, %s56_s18, [#allocation6], %s2197_s2, %s2197_s2, %s2198_s22  }
  0x24   :  { %2187 = dma.done.wait [#allocation3], 8192  }
  0x25   :  { %2188 = vsyncadd [#allocation3], 4294959104 }
  0x26   :  { %2189 = dma.done.wait [#allocation6], 8192  }
  0x27   :  { %2190 = vsyncadd [#allocation6], 4294959104  ;;  %v2027_v0 = vld [vmem:[#allocation2 + $0x40] sm:$0xff]   ;;  %v2031_v4 = vld [vmem:[#allocation2 + $0x48] sm:$0xff]   ;;  %vm2200_vm0 = vmmov 0   ;;  %vm1007_vm1 = vcmask 261120  }
  0x28   :  { %v2028_v1 = vld [vmem:[#allocation2 + $0xc0] sm:$0xff]   ;;  %1860 = vmatprep.subr.bf16.mxu0 %v2027_v0  ;;  %v2032_v5 = vld [vmem:[#allocation2 + $0xc8] sm:$0xff]   ;;  %v2035_v8 = vld [vmem:[#allocation2 + $0x50] sm:$0xff]  }
  0x29   :  { %v2029_v2 = vld [vmem:[#allocation2] sm:$0xff]   ;;  %1882 = vmatprep.subr.bf16.mxu1 %v2028_v1  ;;  %v2033_v6 = vld [vmem:[#allocation2 + $0x8] sm:$0xff]   ;;  %v2036_v9 = vld [vmem:[#allocation2 + $0xd0] sm:$0xff]  }
  0x2a   :  { %v2030_v3 = vld [vmem:[#allocation2 + $0x80] sm:$0xff]   ;;  %1861 = vmatpush3.bf16.msra.mxu0 %v2029_v2  ;;  %v2034_v7 = vld [vmem:[#allocation2 + $0x88] sm:$0xff]   ;;  %v2037_v10 = vld [vmem:[#allocation2 + $0x10] sm:$0xff]  }
  0x2b   :  { %1883 = vmatpush3.bf16.msra.mxu1 %v2030_v3  ;;  %1862 = vmatprep.subr.bf16.mxu0 %v2031_v4  ;;  %v2038_v11 = vld [vmem:[#allocation2 + $0x90] sm:$0xff]   ;;  %v2039_v12 = vld [vmem:[#allocation2 + $0x58] sm:$0xff]   ;;  %v2043_v16 = vld [vmem:[#allocation2 + $0x60] sm:$0xff]  }
  0x2c   :  { %1884 = vmatprep.subr.bf16.mxu1 %v2032_v5  ;;  %v2040_v13 = vld [vmem:[#allocation2 + $0xd8] sm:$0xff]   ;;  %v2044_v17 = vld [vmem:[#allocation2 + $0xe0] sm:$0xff]   ;;  %v2047_v20 = vld [vmem:[#allocation2 + $0x68] sm:$0xff]  }
  0x2d   :  { %v2041_v14 = vld [vmem:[#allocation2 + $0x18] sm:$0xff]   ;;  %v2045_v18 = vld [vmem:[#allocation2 + $0x20] sm:$0xff]   ;;  %v2048_v21 = vld [vmem:[#allocation2 + $0xe8] sm:$0xff]  }
  0x2e   :  { %1863 = vmatpush3.bf16.msra.mxu0 %v2033_v6  ;;  %v2042_v15 = vld [vmem:[#allocation2 + $0x98] sm:$0xff]   ;;  %v2046_v19 = vld [vmem:[#allocation2 + $0xa0] sm:$0xff]   ;;  %v2049_v22 = vld [vmem:[#allocation2 + $0x28] sm:$0xff]  }
  0x2f   :  { %1885 = vmatpush3.bf16.msra.mxu1 %v2034_v7  ;;  %1864 = vmatprep.subr.bf16.mxu0 %v2035_v8  ;;  %v2050_v23 = vld [vmem:[#allocation2 + $0xa8] sm:$0xff]   ;;  %v2051_v24 = vld [vmem:[#allocation2 + $0x70] sm:$0xff]   ;;  %v2055_v28 = vld [vmem:[#allocation2 + $0x78] sm:$0xff]  }
  0x30   :  { %1886 = vmatprep.subr.bf16.mxu1 %v2036_v9  ;;  %v2052_v25 = vld [vmem:[#allocation2 + $0xf0] sm:$0xff]   ;;  %v2056_v29 = vld [vmem:[#allocation2 + $0xf8] sm:$0xff]   ;;  %v71_v32 = vld [vmem:[%s2432_s0] sm:$0xff] }
  0x31   :  { %v2053_v26 = vld [vmem:[#allocation2 + $0x30] sm:$0xff]   ;;  %v2057_v30 = vld [vmem:[#allocation2 + $0x38] sm:$0xff]   ;;  %v72_v33 = vld [vmem:[%s2432_s0 + $0x8] sm:$0xff]  ;;  %v1702_v34 = vcombine.low %v71_v32, %v71_v32  ;;  %v1703_v35 = vcombine.high %v71_v32, %v71_v32 }
  0x32   :  { %1865 = vmatpush3.bf16.msra.mxu0 %v2037_v10  ;;  %v2054_v27 = vld [vmem:[#allocation2 + $0xb0] sm:$0xff]   ;;  %v2058_v31 = vld [vmem:[#allocation2 + $0xb8] sm:$0xff]   ;;  %v1704_v36 = vcombine.low %v72_v33, %v72_v33  ;;  %v1705_v37 = vcombine.high %v72_v33, %v72_v33  ;;  %v2063_v38 = vld [vmem:[#allocation2 + $0x140] sm:$0xff]  }
  0x33   :  { %1887 = vmatpush3.bf16.msra.mxu1 %v2038_v11  ;;  %1866 = vmatprep.subr.bf16.mxu0 %v2039_v12  ;;  %v2064_v39 = vld [vmem:[#allocation2 + $0x1c0] sm:$0xff]   ;;  %v2067_v42 = vld [vmem:[#allocation2 + $0x148] sm:$0xff]   ;;  %v2071_v46 = vld [vmem:[#allocation2 + $0x150] sm:$0xff]  }
  0x34   :  { %1888 = vmatprep.subr.bf16.mxu1 %v2040_v13  ;;  %654 = vmatprep.mubr.bf16.mxu0 %v1703_v35  ;;  %v2065_v40 = vld [vmem:[#allocation2 + $0x100] sm:$0xff]   ;;  %v2068_v43 = vld [vmem:[#allocation2 + $0x1c8] sm:$0xff]   ;;  %v2072_v47 = vld [vmem:[#allocation2 + $0x1d0] sm:$0xff]  }
  0x35   :  { %694 = vmatprep.mubr.bf16.mxu1 %v1705_v37  ;;  %v2066_v41 = vld [vmem:[#allocation2 + $0x180] sm:$0xff]   ;;  %v2069_v44 = vld [vmem:[#allocation2 + $0x108] sm:$0xff]   ;;  %v2073_v48 = vld [vmem:[#allocation2 + $0x110] sm:$0xff]  }
  0x36   :  { %1867 = vmatpush3.bf16.msra.mxu0 %v2041_v14  ;;  %v2070_v45 = vld [vmem:[#allocation2 + $0x188] sm:$0xff]   ;;  %v2074_v49 = vld [vmem:[#allocation2 + $0x190] sm:$0xff]   ;;  %v2075_v50 = vld [vmem:[#allocation2 + $0x158] sm:$0xff]   ;;  %v2199_v14 = vmov 0.0  }
  0x37   :  { %1889 = vmatpush3.bf16.msra.mxu1 %v2042_v15  ;;  %1868 = vmatprep.subr.bf16.mxu0 %v2043_v16  ;;  %v2076_v51 = vld [vmem:[#allocation2 + $0x1d8] sm:$0xff]   ;;  %v2079_v54 = vld [vmem:[#allocation2 + $0x160] sm:$0xff]   ;;  %v2083_v58 = vld [vmem:[#allocation2 + $0x168] sm:$0xff]  }
  0x38   :  { %1890 = vmatprep.subr.bf16.mxu1 %v2044_v17  ;;  %v2077_v52 = vld [vmem:[#allocation2 + $0x118] sm:$0xff]   ;;  %v2080_v55 = vld [vmem:[#allocation2 + $0x1e0] sm:$0xff]   ;;  %v2084_v59 = vld [vmem:[#allocation2 + $0x1e8] sm:$0xff]  }
  0x39   :  { %v2078_v53 = vld [vmem:[#allocation2 + $0x198] sm:$0xff]   ;;  %v2081_v56 = vld [vmem:[#allocation2 + $0x120] sm:$0xff]   ;;  %v2085_v60 = vld [vmem:[#allocation2 + $0x128] sm:$0xff]  }
  0x3a   :  { %1869 = vmatpush3.bf16.msra.mxu0 %v2045_v18  ;;  %v2082_v57 = vld [vmem:[#allocation2 + $0x1a0] sm:$0xff]   ;;  %v2086_v61 = vld [vmem:[#allocation2 + $0x1a8] sm:$0xff]   ;;  %v2087_v62 = vld [vmem:[#allocation2 + $0x170] sm:$0xff]  }
  0x3b   :  { %1891 = vmatpush3.bf16.msra.mxu1 %v2046_v19  ;;  %1870 = vmatprep.subr.bf16.mxu0 %v2047_v20  ;;  %v2088_v63 = vld [vmem:[#allocation2 + $0x1f0] sm:$0xff]   ;;  %v2091_v2 = vld [vmem:[#allocation2 + $0x178] sm:$0xff]   ;;  %v2099_v12 = vld [vmem:[%s2436_s4] sm:$0xff]  }
  0x3c   :  { %1892 = vmatprep.subr.bf16.mxu1 %v2048_v21  ;;  %v2089_v0 = vld [vmem:[#allocation2 + $0x130] sm:$0xff]   ;;  %v2092_v3 = vld [vmem:[#allocation2 + $0x1f8] sm:$0xff]   ;;  %v2100_v13 = vld [vmem:[%s2438_s6] sm:$0xff]  }
  0x3d   :  { %v2090_v1 = vld [vmem:[#allocation2 + $0x1b0] sm:$0xff]   ;;  %v2093_v4 = vld [vmem:[#allocation2 + $0x138] sm:$0xff]   ;;  %v2101_v15 = vld [vmem:[%s2436_s4 + $0x8] sm:$0xff]  }
  0x3e   :  { %1871 = vmatpush3.bf16.msra.mxu0 %v2049_v22  ;;  %v2094_v5 = vld [vmem:[#allocation2 + $0x1b8] sm:$0xff]   ;;  %v73_v6 = vld [vmem:[%s2432_s0 + $0x10] sm:$0xff]  ;;  %v2102_v16 = vld [vmem:[%s2438_s6 + $0x8] sm:$0xff]  }
  0x3f   :  { %1893 = vmatpush3.bf16.msra.mxu1 %v2050_v23  ;;  %1872 = vmatprep.subr.bf16.mxu0 %v2051_v24  ;;  %v1706_v7 = vcombine.low %v73_v6, %v73_v6  ;;  %v1707_v8 = vcombine.high %v73_v6, %v73_v6  ;;  %v74_v9 = vld [vmem:[%s2432_s0 + $0x18] sm:$0xff]  ;;  %v2103_v17 = vld [vmem:[%s2436_s4 + $0x10] sm:$0xff]   ;;  %v2107_v21 = vld [vmem:[%s2436_s4 + $0x20] sm:$0xff]  }
  0x40   :  { %1894 = vmatprep.subr.bf16.mxu1 %v2052_v25  ;;  %v1708_v10 = vcombine.low %v74_v9, %v74_v9  ;;  %v1709_v11 = vcombine.high %v74_v9, %v74_v9  ;;  %v2104_v18 = vld [vmem:[%s2438_s6 + $0x10] sm:$0xff]   ;;  %v2105_v19 = vld [vmem:[%s2436_s4 + $0x18] sm:$0xff]   ;;  %v2108_v22 = vld [vmem:[%s2438_s6 + $0x20] sm:$0xff]  }
  0x41   :  { %v2106_v20 = vld [vmem:[%s2438_s6 + $0x18] sm:$0xff]   ;;  %v2109_v23 = vld [vmem:[%s2436_s4 + $0x28] sm:$0xff]   ;;  %v2111_v25 = vld [vmem:[%s2436_s4 + $0x30] sm:$0xff]  }
  0x42   :  { %1873 = vmatpush3.bf16.msra.mxu0 %v2053_v26  ;;  %v2110_v24 = vld [vmem:[%s2438_s6 + $0x28] sm:$0xff]   ;;  %v2112_v26 = vld [vmem:[%s2438_s6 + $0x30] sm:$0xff]   ;;  %v1087_v6 = vld [vmem:[#allocation5] sm:$0xff] }
  0x43   :  { %1895 = vmatpush3.bf16.msra.mxu1 %v2054_v27  ;;  %1874 = vmatprep.subr.bf16.mxu0 %v2055_v28  ;;  %v2113_v27 = vld [vmem:[%s2436_s4 + $0x38] sm:$0xff]  }
  0x44   :  { %1896 = vmatprep.subr.bf16.mxu1 %v2056_v29  ;;  %v2114_v28 = vld [vmem:[%s2438_s6 + $0x38] sm:$0xff]  }
  0x46   :  { %1875 = vmatpush3.bf16.msra.mxu0 %v2057_v30 }
  0x47   :  { %1897 = vmatpush3.bf16.msra.mxu1 %v2058_v31  ;;  %1904 = vmatprep.subr.bf16.mxu0 %v2063_v38  ;;  %v1701_v31 = vld [vmem:[%s2435_s3] ss:$0 sm:$0xff] }
  0x48   :  { %1926 = vmatprep.subr.bf16.mxu1 %v2064_v39 }
  0x49   :  { %655 = vmatmul.mubr.bf16.vlgmr.msra.gmra.mrb[0].mxu0 %v1702_v34 }
  0x4a   :  { %695 = vmatmul.mubr.bf16.vlgmr.msra.gmra.mrb[0].mxu1 %v1704_v36  ;;  %1905 = vmatpush3.bf16.msra.mxu0 %v2065_v40 }
  0x4b   :  { %1927 = vmatpush3.bf16.msra.mxu1 %v2066_v41  ;;  %1906 = vmatprep.subr.bf16.mxu0 %v2067_v42 }
  0x4c   :  { %1928 = vmatprep.subr.bf16.mxu1 %v2068_v43  ;;  %734 = vmatprep.mubr.bf16.mxu0 %v1707_v8  ;;  %v2395_v8 = vld [vmem:[#allocation5 + $0x8] sm:$0xff] }
  0x4d   :  { %774 = vmatprep.mubr.bf16.mxu1 %v1709_v11  ;;  %v1092_v11 = vld [vmem:[#allocation5 + $0x28] sm:$0xff] }
  0x4e   :  { %1907 = vmatpush3.bf16.msra.mxu0 %v2069_v44 }
  0x4f   :  { %1929 = vmatpush3.bf16.msra.mxu1 %v2070_v45  ;;  %1908 = vmatprep.subr.bf16.mxu0 %v2071_v46 }
  0x50   :  { %1930 = vmatprep.subr.bf16.mxu1 %v2072_v47 }
  0x52   :  { %1909 = vmatpush3.bf16.msra.mxu0 %v2073_v48 }
  0x53   :  { %1931 = vmatpush3.bf16.msra.mxu1 %v2074_v49  ;;  %1910 = vmatprep.subr.bf16.mxu0 %v2075_v50 }
  0x54   :  { %1932 = vmatprep.subr.bf16.mxu1 %v2076_v51 }
  0x56   :  { %1911 = vmatpush3.bf16.msra.mxu0 %v2077_v52 }
  0x57   :  { %1933 = vmatpush3.bf16.msra.mxu1 %v2078_v53  ;;  %1912 = vmatprep.subr.bf16.mxu0 %v2079_v54 }
  0x58   :  { %1934 = vmatprep.subr.bf16.mxu1 %v2080_v55 }
  0x5a   :  { %1913 = vmatpush3.bf16.msra.mxu0 %v2081_v56  ;;  %v1774_v56 = vld [vmem:[%s2437_s5] ss:$0 sm:$0xff] }
  0x5b   :  { %1935 = vmatpush3.bf16.msra.mxu1 %v2082_v57  ;;  %1914 = vmatprep.subr.bf16.mxu0 %v2083_v58 }
  0x5c   :  { %1936 = vmatprep.subr.bf16.mxu1 %v2084_v59 }
  0x5e   :  { %1915 = vmatpush3.bf16.msra.mxu0 %v2085_v60 }
  0x5f   :  { %1937 = vmatpush3.bf16.msra.mxu1 %v2086_v61  ;;  %1916 = vmatprep.subr.bf16.mxu0 %v2087_v62 }
  0x60   :  { %1938 = vmatprep.subr.bf16.mxu1 %v2088_v63 }
  0x62   :  { %1917 = vmatpush3.bf16.msra.mxu0 %v2089_v0 }
  0x63   :  { %1939 = vmatpush3.bf16.msra.mxu1 %v2090_v1  ;;  %1918 = vmatprep.subr.bf16.mxu0 %v2091_v2 }
  0x64   :  { %1940 = vmatprep.subr.bf16.mxu1 %v2092_v3 }
  0x66   :  { %1919 = vmatpush3.bf16.msra.mxu0 %v2093_v4  ;;  %v2115_v4 = vld [vmem:[%s2440_s8] sm:$0xff]  }
  0x67   :  { %1941 = vmatpush3.bf16.msra.mxu1 %v2094_v5  ;;  %1969 = vmatprep.subr.bf16.mxu0 %v2199_v14  ;;  %v2116_v5 = vld [vmem:[%s2440_s8 + $0x8] sm:$0xff]  }
  0x68   :  { %1989 = vmatprep.subr.bf16.mxu1 %v2199_v14 }
  0x69   :  { %735 = vmatmul.mubr.bf16.vlgmr.msra.gmra.mrb[4].mxu0 %v1706_v7  ;;  %v1091_v7 = vld [vmem:[#allocation5 + $0x20] sm:$0xff] }
  0x6a   :  { %775 = vmatmul.mubr.bf16.vlgmr.msra.gmra.mrb[4].mxu1 %v1708_v10  ;;  %1970 = vmatpush3.bf16.msra.mxu0 %v2099_v12  ;;  %v1796_v9 = vcombine.low %v1087_v6, %v1091_v7  ;;  %v1797_v10 = vcombine.high %v1087_v6, %v1091_v7  ;;  %v1095_v12 = vld [vmem:[#allocation5 + $0x40] sm:$0xff] }
  0x6b   :  { %1990 = vmatpush3.bf16.msra.mxu1 %v2100_v13  ;;  %1971 = vmatprep.subr.bf16.mxu0 %v2199_v14  ;;  %v1099_v13 = vld [vmem:[#allocation5 + $0x60] sm:$0xff] }
  0x6c   :  { %1991 = vmatprep.subr.bf16.mxu1 %v2199_v14  ;;  %1985 = vmatprep.mubr.msk.bf16.mxu0 %vm2200_vm0, %v2199_v14 }
  0x6d   :  { %2005 = vmatprep.mubr.msk.bf16.mxu1 %vm2200_vm0, %v2199_v14 }
  0x6e   :  { %1972 = vmatpush3.bf16.msra.mxu0 %v2101_v15  ;;  %v1798_v15 = vcombine.low %v2395_v8, %v1092_v11 }
  0x6f   :  { %1992 = vmatpush3.bf16.msra.mxu1 %v2102_v16  ;;  %1973 = vmatprep.subr.bf16.mxu0 %v2199_v14  ;;  %v1799_v16 = vcombine.high %v2395_v8, %v1092_v11  ;;  %v1144_v11 = vld [vmem:[#allocation5 + $0x1c8] sm:$0xff] }
  0x70   :  { %1993 = vmatprep.subr.bf16.mxu1 %v2199_v14 }
  0x72   :  { %1974 = vmatpush3.bf16.msra.mxu0 %v2103_v17  ;;  %v1805_v17 = vcombine.high %v1095_v12, %v1099_v13 }
  0x73   :  { %1994 = vmatpush3.bf16.msra.mxu1 %v2104_v18  ;;  %1975 = vmatprep.subr.bf16.mxu0 %v2199_v14  ;;  %v1103_v18 = vld [vmem:[#allocation5 + $0x80] sm:$0xff] }
  0x74   :  { %1995 = vmatprep.subr.bf16.mxu1 %v2199_v14 }
  0x76   :  { %1976 = vmatpush3.bf16.msra.mxu0 %v2105_v19  ;;  %v1107_v19 = vld [vmem:[#allocation5 + $0xa0] sm:$0xff] }
  0x77   :  { %1996 = vmatpush3.bf16.msra.mxu1 %v2106_v20  ;;  %1977 = vmatprep.subr.bf16.mxu0 %v2199_v14  ;;  %v1813_v20 = vcombine.high %v1103_v18, %v1107_v19 }
  0x78   :  { %1997 = vmatprep.subr.bf16.mxu1 %v2199_v14 }
  0x7a   :  { %1978 = vmatpush3.bf16.msra.mxu0 %v2107_v21  ;;  %v1812_v21 = vcombine.low %v1103_v18, %v1107_v19  ;;  %v1093_v18 = vld [vmem:[#allocation5 + $0x30] sm:$0xff]  ;;  %v1090_v19 = vld [vmem:[#allocation5 + $0x18] sm:$0xff] }
  0x7b   :  { %1998 = vmatpush3.bf16.msra.mxu1 %v2108_v22  ;;  %1979 = vmatprep.subr.bf16.mxu0 %v2199_v14  ;;  %v1111_v22 = vld [vmem:[#allocation5 + $0xc0] sm:$0xff] }
  0x7c   :  { %1999 = vmatprep.subr.bf16.mxu1 %v2199_v14 }
  0x7e   :  { %1980 = vmatpush3.bf16.msra.mxu0 %v2109_v23  ;;  %v1115_v23 = vld [vmem:[#allocation5 + $0xe0] sm:$0xff] }
  0x7f   :  { %2000 = vmatpush3.bf16.msra.mxu1 %v2110_v24  ;;  %1981 = vmatprep.subr.bf16.mxu0 %v2199_v14  ;;  %v1821_v24 = vcombine.high %v1111_v22, %v1115_v23 }
  0x80   :  { %2001 = vmatprep.subr.bf16.mxu1 %v2199_v14 }
  0x82   :  { %1982 = vmatpush3.bf16.msra.mxu0 %v2111_v25  ;;  %v1820_v25 = vcombine.low %v1111_v22, %v1115_v23 }
  0x83   :  { %2002 = vmatpush3.bf16.msra.mxu1 %v2112_v26  ;;  %1983 = vmatprep.subr.bf16.mxu0 %v2199_v14  ;;  %v1119_v26 = vld [vmem:[#allocation5 + $0x100] sm:$0xff] }
  0x84   :  { %2003 = vmatprep.subr.bf16.mxu1 %v2199_v14 }
  0x86   :  { %1984 = vmatpush3.bf16.msra.mxu0 %v2113_v27  ;;  %v1123_v27 = vld [vmem:[#allocation5 + $0x120] sm:$0xff] }
  0x87   :  { %2004 = vmatpush3.bf16.msra.mxu1 %v2114_v28  ;;  %2009 = vmatprep.subr.bf16.mxu0 %v2199_v14  ;;  %v1829_v28 = vcombine.high %v1119_v26, %v1123_v27 }
  0x88   :  { %1513 = vmatprep.subr.bf16.mxu1 %v1797_v10  ;;  %v1147_v10 = vld [vmem:[#allocation5 + $0x1e0] sm:$0xff] }
 0x11c   :  { %v1876_v29 = vpop.f32.mrb[0].mxu0 }
 0x11d   :  { %v1898_v30 = vpop.f32.mrb[0].mxu1  ;;  %v1877_v32 = vpop.f32.mrb[1].mxu0 }
 0x11e   :  { %v1899_v33 = vpop.f32.mrb[1].mxu1  ;;  %v1878_v34 = vadd.f32 %v1877_v32, %v1876_v29  ;;  %v1879_v36 = vpop.f32.mrb[2].mxu0  ;;  %v1828_v29 = vcombine.low %v1119_v26, %v1123_v27  ;;  %v1792_v26 = vld [vmem:[%s2441_s9] ss:$0 sm:$0xff] }
 0x11f   :  { %v1900_v35 = vadd.f32 %v1899_v33, %v1898_v30  ;;  %v1901_v37 = vpop.f32.mrb[2].mxu1  ;;  %v1880_v38 = vpop.f32.mrb[3].mxu0  ;;  %v1127_v30 = vld [vmem:[#allocation5 + $0x140] sm:$0xff] }
 0x120   :  { %v1902_v39 = vpop.f32.mrb[3].mxu1  ;;  %v657_v40 = vadd.f32 %v1878_v34, %v1701_v31  ;;  %v1131_v31 = vld [vmem:[#allocation5 + $0x160] sm:$0xff] }
 0x121   :  { %v1837_v32 = vcombine.high %v1127_v30, %v1131_v31  ;;  %v1836_v33 = vcombine.low %v1127_v30, %v1131_v31  ;;  %v1135_v34 = vld [vmem:[#allocation5 + $0x180] sm:$0xff]  ;;  %v1097_v30 = vld [vmem:[#allocation5 + $0x50] sm:$0xff] }
 0x122   :  { %v697_v41 = vadd.f32 %v1900_v35, %v657_v40  ;;  %v1139_v35 = vld [vmem:[#allocation5 + $0x1a0] sm:$0xff] }
 0x123   :  { %v1845_v36 = vcombine.high %v1135_v34, %v1139_v35  ;;  %v1844_v37 = vcombine.low %v1135_v34, %v1139_v35  ;;  %v1783_v38 = vld [vmem:[%s2439_s7] ss:$0 sm:$0xff]  ;;  %v1102_v34 = vld [vmem:[#allocation5 + $0x78] sm:$0xff] }
 0x13c   :  { %v1920_v42 = vpop.f32.mrb[4].mxu0 }
 0x13d   :  { %v1942_v43 = vpop.f32.mrb[4].mxu1  ;;  %v1921_v44 = vpop.f32.mrb[5].mxu0 }
 0x13e   :  { %v1943_v45 = vpop.f32.mrb[5].mxu1  ;;  %v1922_v46 = vadd.f32 %v1921_v44, %v1920_v42  ;;  %v1923_v48 = vpop.f32.mrb[6].mxu0 }
 0x13f   :  { %v1944_v47 = vadd.f32 %v1943_v45, %v1942_v43  ;;  %v1945_v49 = vpop.f32.mrb[6].mxu1  ;;  %v1924_v50 = vpop.f32.mrb[7].mxu0  ;;  %v1015_v43 = vld [vmem:[%s2433_s1] sm:$0xff]  ;;  %v1100_v48 = vld [vmem:[#allocation5 + $0x68] sm:$0xff] }
 0x140   :  { %v1946_v51 = vpop.f32.mrb[7].mxu1  ;;  %v737_v52 = vadd.f32 %v1922_v46, %v697_v41 }
 0x142   :  { %v777_v53 = vadd.f32 %v1944_v47, %v737_v52  ;;  %v1096_v47 = vld [vmem:[#allocation5 + $0x48] sm:$0xff] }
 0x143   :  { %v1807_v51 = vcombine.high %v1096_v47, %v1100_v48  ;;  %v1104_v52 = vld [vmem:[#allocation5 + $0x88] sm:$0xff] }
 0x144   :  { %v782_v54 = vmax.f32 %v777_v53, 0.0  ;;  %v1108_v53 = vld [vmem:[#allocation5 + $0xa8] sm:$0xff] }
 0x146   :  { %v783_v55 = vpack.c.bf16 %v782_v54, %v782_v54  ;;  %v1806_v54 = vcombine.low %v1096_v47, %v1100_v48  ;;  %v1113_v48 = vld [vmem:[#allocation5 + $0xd0] sm:$0xff] }
 0x148   :  { %1986 = vmatmul.mubr.bf16.vlgmr.msra.gmra.mrb[8].mxu0 %v783_v55  ;;  %2006 = vmatmul.mubr.bf16.vlgmr.msra.gmra.mrb[8].mxu1 %v783_v55  ;;  %v1815_v55 = vcombine.high %v1104_v52, %v1108_v53 }
 0x149   :  { %2013 = vmatprep.mubr.msk.bf16.mxu0 %vm2200_vm0, %v2199_v14  ;;  %2010 = vmatpush3.bf16.msra.mxu0 %v2115_v4  ;;  %v1136_v4 = vld [vmem:[#allocation5 + $0x188] sm:$0xff] }
 0x14a   :  { %2011 = vmatprep.subr.bf16.mxu0 %v2199_v14  ;;  %1514 = vmatpush1.bf16.msra.mxu1 %v1796_v9  ;;  %v1804_v14 = vcombine.low %v1095_v12, %v1099_v13  ;;  %v1143_v9 = vld [vmem:[#allocation5 + $0x1c0] sm:$0xff]  ;;  %v1148_v13 = vld [vmem:[#allocation5 + $0x1e8] sm:$0xff] }
 0x14b   :  { %1515 = vmatprep.subr.bf16.mxu1 %v1805_v17  ;;  %v1853_v12 = vcombine.high %v1143_v9, %v1147_v10  ;;  %v1855_v17 = vcombine.high %v1144_v11, %v1148_v13 }
 0x14d   :  { %2012 = vmatpush3.bf16.msra.mxu0 %v2116_v5  ;;  %v1140_v5 = vld [vmem:[#allocation5 + $0x1a8] sm:$0xff] }
 0x14e   :  { %1554 = vmatprep.subr.bf16.mxu0 %v1799_v16  ;;  %1516 = vmatpush1.bf16.msra.mxu1 %v1804_v14  ;;  %v1847_v7 = vcombine.high %v1136_v4, %v1140_v5  ;;  %v1846_v8 = vcombine.low %v1136_v4, %v1140_v5  ;;  %v1854_v16 = vcombine.low %v1144_v11, %v1148_v13  ;;  %v1089_v14 = vld [vmem:[#allocation5 + $0x10] sm:$0xff]  ;;  %v1142_v11 = vld [vmem:[#allocation5 + $0x1b8] sm:$0xff] }
 0x14f   :  { %1517 = vmatprep.subr.bf16.mxu1 %v1813_v20  ;;  %v1801_v20 = vcombine.high %v1089_v14, %v1093_v18  ;;  %v1800_v22 = vcombine.low %v1089_v14, %v1093_v18  ;;  %v1149_v14 = vld [vmem:[#allocation5 + $0x1f0] sm:$0xff]  ;;  %v1146_v18 = vld [vmem:[#allocation5 + $0x1d8] sm:$0xff] }
 0x152   :  { %1518 = vmatpush1.bf16.msra.mxu1 %v1812_v21  ;;  %v1094_v21 = vld [vmem:[#allocation5 + $0x38] sm:$0xff] }
 0x153   :  { %1519 = vmatprep.subr.bf16.mxu1 %v1821_v24  ;;  %v1802_v23 = vcombine.low %v1090_v19, %v1094_v21  ;;  %v1803_v24 = vcombine.high %v1090_v19, %v1094_v21  ;;  %v1150_v19 = vld [vmem:[#allocation5 + $0x1f8] sm:$0xff] }
 0x156   :  { %1520 = vmatpush1.bf16.msra.mxu1 %v1820_v25  ;;  %v2201_v25 = vmov 0  }
 0x157   :  { %1521 = vmatprep.subr.bf16.mxu1 %v1829_v28  ;;  %1545 = vmatprep.mubr.bf16.mxu1 %v2201_v25 }
 0x15a   :  { %1522 = vmatpush1.bf16.msra.mxu1 %v1828_v29 }
 0x15b   :  { %1523 = vmatprep.subr.bf16.mxu1 %v1837_v32  ;;  %v1101_v32 = vld [vmem:[#allocation5 + $0x70] sm:$0xff] }
 0x15e   :  { %1524 = vmatpush1.bf16.msra.mxu1 %v1836_v33  ;;  %v1098_v33 = vld [vmem:[#allocation5 + $0x58] sm:$0xff] }
 0x15f   :  { %1525 = vmatprep.subr.bf16.mxu1 %v1845_v36 }
 0x162   :  { %1526 = vmatpush1.bf16.msra.mxu1 %v1844_v37 }
 0x163   :  { %1527 = vmatprep.subr.bf16.mxu1 %v1853_v12 }
 0x21b   :  { %v889_v57 = vpop.f32.mrb[8].mxu0  ;;  %v2381_v58 = vpop.f32.mrb[8].mxu1 }
 0x21c   :  { %v2383_v59 = vadd.f32 %v1774_v56, %v889_v57  ;;  %v1987_v60 = vpop.f32.mrb[9].mxu0  ;;  %v2007_v61 = vpop.f32.mrb[9].mxu1  ;;  %v1001_v39 = vadd.f32 %v1783_v38, %v2381_v58  ;;  %v1112_v56 = vld [vmem:[#allocation5 + $0xc8] sm:$0xff]  ;;  %v1814_v58 = vcombine.low %v1104_v52, %v1108_v53  ;;  %v1809_v38 = vcombine.high %v1097_v30, %v1101_v32 }
 0x21d   :  { %v892_v62 = vpop.f32.mrb[10].mxu0  ;;  %v1003_v63 = vpop.f32.mrb[10].mxu1  ;;  %v1116_v57 = vld [vmem:[#allocation5 + $0xe8] sm:$0xff] }
 0x21e   :  { %v1988_v0 = vpop.f32.mrb[11].mxu0  ;;  %v2008_v1 = vpop.f32.mrb[11].mxu1  ;;  %v1006_v2 = vmul.f32 %v2383_v59, %v2383_v59  ;;  %v1013_v40 = vmul.f32 1.442695, %v1001_v39  ;;  %v1823_v60 = vcombine.high %v1112_v56, %v1116_v57  ;;  %v1124_v61 = vld [vmem:[#allocation5 + $0x128] sm:$0xff]  ;;  %v1822_v62 = vcombine.low %v1112_v56, %v1116_v57  ;;  %v1121_v56 = vld [vmem:[#allocation5 + $0x110] sm:$0xff] }
 0x21f   :  { %v1128_v0 = vld [vmem:[#allocation5 + $0x148] sm:$0xff]  ;;  %v1811_v39 = vcombine.high %v1098_v33, %v1102_v34  ;;  %v1125_v57 = vld [vmem:[#allocation5 + $0x130] sm:$0xff] }
 0x220   :  { %v1008_v3 = vsel %vm1007_vm1, %v1006_v2, 0.0  ;;  %2117 = vpow2.f32 %v1013_v40  ;;  %v1132_v1 = vld [vmem:[#allocation5 + $0x168] sm:$0xff]  ;;  %v1105_v40 = vld [vmem:[#allocation5 + $0x90] sm:$0xff]  ;;  %v1832_v4 = vcombine.low %v1121_v56, %v1125_v57 }
 0x221   :  { %1009 = vadd.xlane.f32.xlu0 %v1008_v3  ;;  %v1839_v3 = vcombine.high %v1128_v0, %v1132_v1  ;;  %v1838_v6 = vcombine.low %v1128_v0, %v1132_v1  ;;  %v1129_v0 = vld [vmem:[#allocation5 + $0x150] sm:$0xff] }
 0x222   :  { %v1133_v1 = vld [vmem:[#allocation5 + $0x170] sm:$0xff] }
 0x223   :  { %v1840_v12 = vcombine.low %v1129_v0, %v1133_v1 }
 0x22a   :  { %v2118_v42 = vpop.eup %2117 }
 0x22b   :  { %v1016_v45 = vmul.f32 %v2118_v42, %v1015_v43  ;;  %v1106_v42 = vld [vmem:[#allocation5 + $0x98] sm:$0xff] }
 0x22c   :  { %v1110_v43 = vld [vmem:[#allocation5 + $0xb8] sm:$0xff] }
 0x22d   :  { %v1819_v47 = vcombine.high %v1106_v42, %v1110_v43  ;;  %v1818_v53 = vcombine.low %v1106_v42, %v1110_v43 }
 0x2ae   :  { %v1010_v41 = vpop.xlane.xlu0 %1009 }
 0x2af   :  { %2119 = vrsqrt.f32 %v1010_v41  ;;  %v1109_v41 = vld [vmem:[#allocation5 + $0xb0] sm:$0xff] }
 0x2b0   :  { %v1816_v52 = vcombine.low %v1105_v40, %v1109_v41 }
 0x2b9   :  { %v2120_v44 = vpop.eup %2119 }
 0x2ba   :  { %v1012_v46 = vmul.f32 %v2120_v44, %v2383_v59  ;;  %v1120_v59 = vld [vmem:[#allocation5 + $0x108] sm:$0xff]  ;;  %v1808_v44 = vcombine.low %v1097_v30, %v1101_v32  ;;  %v1151_v30 = vld [vmem:[%s2443_s11] sm:$0xff]  ;;  %s2202_s11 = smov [#allocation7]  }
 0x2bb   :  { %v1831_v63 = vcombine.high %v1120_v59, %v1124_v61  ;;  %v1830_v2 = vcombine.low %v1120_v59, %v1124_v61  ;;  %s1691_s17 = sshll.u32 %s2202_s11, 4  ;;  %s1692_s17 = int_to_ptr.vmem [resolvable:$true] %s1691_s17 }
 0x2bc   :  { %v1017_v49 = vadd.f32 %v1016_v45, %v1012_v46  ;;  %v1810_v45 = vcombine.low %v1098_v33, %v1102_v34  ;;  %v1817_v46 = vcombine.high %v1105_v40, %v1109_v41  ;;  %s2165_s18 = scalar_lea.vmem %s1692_s17, 1024  ;;  %p2170_p3 = scmp.lt.s32.totalorder %s1692_s17, %s1692_s17 }
 0x2bd   :  { %p2166_p2 = scmp.ne.s32.totalorder %s1692_s17, %s2165_s18  ;;  %p2171_p4 = scmp.lt.s32.totalorder %s2165_s18, %s2165_s18 }
 0x2be   :  { %v1018_v50 = vpack.c.bf16 %v1017_v49, %v1017_v49  ;;  %v1117_v49 = vld [vmem:[#allocation5 + $0xf0] sm:$0xff] }
 0x2bf   :  { %v1824_v59 = vcombine.low %v1113_v48, %v1117_v49  ;;  %p2172_p5 = por %p2171_p4, %p2170_p3 }
 0x2c0   :  { %2014 = vmatmul.mubr.msk.bf16.vlgmr.msra.gmra.mrb[12].mxu0 %vm1007_vm1, %v1018_v50  ;;  %v1114_v50 = vld [vmem:[#allocation5 + $0xd8] sm:$0xff] }
 0x2c1   :  { %1555 = vmatpush1.bf16.msra.mxu0 %v1798_v15  ;;  %v1852_v15 = vcombine.low %v1143_v9, %v1147_v10  ;;  %1586 = vmatprep.mubr.bf16.mxu0 %v2201_v25  ;;  %v1141_v9 = vld [vmem:[#allocation5 + $0x1b0] sm:$0xff]  ;;  %v1138_v10 = vld [vmem:[#allocation5 + $0x198] sm:$0xff]  ;;  %p2173_p6 = pnand %p2172_p5, %p2166_p2 }
 0x2c2   :  { %1556 = vmatprep.subr.bf16.mxu0 %v1807_v51  ;;  %v1118_v51 = vld [vmem:[#allocation5 + $0xf8] sm:$0xff]  ;;  %v1850_v21 = vcombine.low %v1138_v10, %v1142_v11 }
 0x2c3   :  { %1528 = vmatpush1.bf16.msra.mxu1 %v1852_v15  ;;  %v1826_v61 = vcombine.low %v1114_v50, %v1118_v51 }
 0x2c4   :  { %1595 = vmatprep.subr.bf16.mxu1 %v1801_v20 }
 0x2c5   :  { %1557 = vmatpush1.bf16.msra.mxu0 %v1806_v54  ;;  %v1825_v54 = vcombine.high %v1113_v48, %v1117_v49 }
 0x2c6   :  { %1558 = vmatprep.subr.bf16.mxu0 %v1815_v55  ;;  %v1827_v55 = vcombine.high %v1114_v50, %v1118_v51 }
 0x2c9   :  { %1559 = vmatpush1.bf16.msra.mxu0 %v1814_v58  ;;  %v1122_v58 = vld [vmem:[#allocation5 + $0x118] sm:$0xff] }
 0x2ca   :  { %1560 = vmatprep.subr.bf16.mxu0 %v1823_v60  ;;  %v1126_v60 = vld [vmem:[#allocation5 + $0x138] sm:$0xff] }
 0x2cb   :  { %v1834_v5 = vcombine.low %v1122_v58, %v1126_v60 }
 0x2cd   :  { %1561 = vmatpush1.bf16.msra.mxu0 %v1822_v62  ;;  %v1833_v62 = vcombine.high %v1121_v56, %v1125_v57 }
 0x2ce   :  { %1562 = vmatprep.subr.bf16.mxu0 %v1831_v63  ;;  %v1835_v63 = vcombine.high %v1122_v58, %v1126_v60 }
 0x2d1   :  { %1563 = vmatpush1.bf16.msra.mxu0 %v1830_v2  ;;  %v1130_v2 = vld [vmem:[#allocation5 + $0x158] sm:$0xff] }
 0x2d2   :  { %1564 = vmatprep.subr.bf16.mxu0 %v1839_v3  ;;  %v1134_v3 = vld [vmem:[#allocation5 + $0x178] sm:$0xff] }
 0x2d3   :  { %v1842_v13 = vcombine.low %v1130_v2, %v1134_v3 }
 0x2d5   :  { %1565 = vmatpush1.bf16.msra.mxu0 %v1838_v6  ;;  %v1841_v6 = vcombine.high %v1129_v0, %v1133_v1 }
 0x2d6   :  { %1566 = vmatprep.subr.bf16.mxu0 %v1847_v7  ;;  %v1843_v7 = vcombine.high %v1130_v2, %v1134_v3 }
 0x2d9   :  { %1567 = vmatpush1.bf16.msra.mxu0 %v1846_v8  ;;  %v1137_v8 = vld [vmem:[#allocation5 + $0x190] sm:$0xff] }
 0x2da   :  { %1568 = vmatprep.subr.bf16.mxu0 %v1855_v17  ;;  %v1849_v15 = vcombine.high %v1137_v8, %v1141_v9  ;;  %v1145_v17 = vld [vmem:[#allocation5 + $0x1d0] sm:$0xff]  ;;  %v1848_v20 = vcombine.low %v1137_v8, %v1141_v9 }
 0x2dd   :  { %1569 = vmatpush1.bf16.msra.mxu0 %v1854_v16  ;;  %v1851_v16 = vcombine.high %v1138_v10, %v1142_v11 }
 0x2de   :  { %1636 = vmatprep.subr.bf16.mxu0 %v1803_v24  ;;  %v1856_v24 = vcombine.low %v1145_v17, %v1149_v14 }
 0x393   :  { %v1079_v27 = vpop.f32.mrb[12].mxu0 }
 0x394   :  { %v1080_v28 = vadd.f32 %v1792_v26, %v1079_v27  ;;  %v2015_v29 = vpop.f32.mrb[13].mxu0  ;;  %v1153_v26 = vlaneseq }
 0x395   :  { %v1082_v31 = vpop.f32.mrb[14].mxu0 }
 0x396   :  { %v1085_v35 = vmax.f32 %v1080_v28, 0.0  ;;  %v2016_v36 = vpop.f32.mrb[15].mxu0  ;;  %v1154_v27 = vshrl.u32 %v1153_v26, 7 }
 0x398   :  { %v2411_v37 = vpack.c.bf16 %v1085_v35, %v1085_v35  ;;  %v1155_v28 = vsub.s32 0, %v1154_v27  ;;  %v1163_v29 = vsub.s32 2, %v1154_v27  ;;  %v1159_v31 = vsub.s32 1, %v1154_v27 }
 0x399   :  { %v1167_v32 = vsub.s32 3, %v1154_v27  ;;  %v1171_v49 = vsub.s32 4, %v1154_v27  ;;  %v1179_v50 = vsub.s32 6, %v1154_v27  ;;  %v1175_v51 = vsub.s32 5, %v1154_v27 }
 0x39a   :  { %1546 = vmatmul.mubr.bf16.vlgmr.msra.gmra.mrb[12].mxu1 %v2411_v37  ;;  %1587 = vmatmul.mubr.bf16.vlgmr.msra.gmra.mrb[16].mxu0 %v2411_v37  ;;  %v1156_v33 = vrot.slane %v1151_v30, %v1155_v28  ;;  %v1164_v34 = vrot.slane %v1151_v30, %v1163_v29  ;;  %v1160_v35 = vrot.slane %v1151_v30, %v1159_v31 }
 0x39b   :  { %1596 = vmatpush1.bf16.msra.mxu1 %v1800_v22  ;;  %1637 = vmatpush1.bf16.msra.mxu0 %v1802_v23  ;;  %v1857_v22 = vcombine.high %v1145_v17, %v1149_v14  ;;  %v1859_v23 = vcombine.high %v1146_v18, %v1150_v19  ;;  %v1168_v36 = vrot.slane %v1151_v30, %v1167_v32 }
 0x39c   :  { %1597 = vmatprep.subr.bf16.mxu1 %v1809_v38  ;;  %1638 = vmatprep.subr.bf16.mxu0 %v1811_v39 }
 0x39d   :  { %1627 = vmatprep.mubr.bf16.mxu1 %v2201_v25  ;;  %1668 = vmatprep.mubr.bf16.mxu0 %v2201_v25  ;;  %v1858_v25 = vcombine.low %v1146_v18, %v1150_v19 }
 0x39f   :  { %1598 = vmatpush1.bf16.msra.mxu1 %v1808_v44  ;;  %1639 = vmatpush1.bf16.msra.mxu0 %v1810_v45 }
 0x3a0   :  { %1599 = vmatprep.subr.bf16.mxu1 %v1817_v46  ;;  %1640 = vmatprep.subr.bf16.mxu0 %v1819_v47 }
 0x3a3   :  { %1600 = vmatpush1.bf16.msra.mxu1 %v1816_v52  ;;  %1641 = vmatpush1.bf16.msra.mxu0 %v1818_v53  ;;  %v1183_v52 = vsub.s32 7, %v1154_v27  ;;  %v1172_v53 = vrot.slane %v1151_v30, %v1171_v49 }
 0x3a4   :  { %1601 = vmatprep.subr.bf16.mxu1 %v1825_v54  ;;  %1642 = vmatprep.subr.bf16.mxu0 %v1827_v55  ;;  %v1180_v54 = vrot.slane %v1151_v30, %v1179_v50  ;;  %v1176_v55 = vrot.slane %v1151_v30, %v1175_v51 }
 0x3a5   :  { %v1184_v56 = vrot.slane %v1151_v30, %v1183_v52 }
 0x3a7   :  { %1602 = vmatpush1.bf16.msra.mxu1 %v1824_v59  ;;  %1643 = vmatpush1.bf16.msra.mxu0 %v1826_v61 }
 0x3a8   :  { %1603 = vmatprep.subr.bf16.mxu1 %v1833_v62  ;;  %1644 = vmatprep.subr.bf16.mxu0 %v1835_v63 }
 0x3ab   :  { %1604 = vmatpush1.bf16.msra.mxu1 %v1832_v4  ;;  %1645 = vmatpush1.bf16.msra.mxu0 %v1834_v5 }
 0x3ac   :  { %1605 = vmatprep.subr.bf16.mxu1 %v1841_v6  ;;  %1646 = vmatprep.subr.bf16.mxu0 %v1843_v7 }
 0x3af   :  { %1606 = vmatpush1.bf16.msra.mxu1 %v1840_v12  ;;  %1647 = vmatpush1.bf16.msra.mxu0 %v1842_v13 }
 0x3b0   :  { %1607 = vmatprep.subr.bf16.mxu1 %v1849_v15  ;;  %1648 = vmatprep.subr.bf16.mxu0 %v1851_v16 }
 0x3b3   :  { %1608 = vmatpush1.bf16.msra.mxu1 %v1848_v20  ;;  %1649 = vmatpush1.bf16.msra.mxu0 %v1850_v21 }
 0x3b4   :  { %1609 = vmatprep.subr.bf16.mxu1 %v1857_v22  ;;  %1650 = vmatprep.subr.bf16.mxu0 %v1859_v23 }
 0x3b7   :  { %1610 = vmatpush1.bf16.msra.mxu1 %v1856_v24  ;;  %1651 = vmatpush1.bf16.msra.mxu0 %v1858_v25 }
 0x3ba   :  { %1628 = vmatmul.mubr.bf16.vlgmr.msra.gmra.mrb[16].mxu1 %v2411_v37  ;;  %1669 = vmatmul.mubr.bf16.vlgmr.msra.gmra.mrb[20].mxu0 %v2411_v37 }
 0x46d   :  { %v1547_v38 = vpop.f32.mrb[12].mxu1  ;;  %v1588_v39 = vpop.f32.mrb[16].mxu0 }
 0x46e   :  { %v1548_v40 = vadd.f32 %v1547_v38, %v1156_v33  ;;  %v1589_v41 = vadd.f32 %v1588_v39, %v1164_v34  ;;  %v1549_v42 = vpop.f32.mrb[13].mxu1  ;;  %v1590_v37 = vpop.f32.mrb[17].mxu0 }
 0x46f   :  { %v1550_v43 = vadd.f32 %v1549_v42, %v1160_v35  ;;  %v1591_v44 = vadd.f32 %v1590_v37, %v1168_v36  ;;  %v1551_v45 = vpop.f32.mrb[14].mxu1  ;;  %v1592_v46 = vpop.f32.mrb[18].mxu0 }
 0x470   :  { %1677 = vst [vmem:[#allocation7] sm:$0xff] %v1548_v40  ;;  %1679 = vst [vmem:[#allocation7 + $0x10] sm:$0xff] %v1589_v41  ;;  %v1552_v47 = vpop.f32.mrb[15].mxu1  ;;  %v1593_v48 = vpop.f32.mrb[19].mxu0 }
 0x471   :  { %1678 = vst [vmem:[#allocation7 + $0x8] sm:$0xff] %v1550_v43  ;;  %1680 = vst [vmem:[#allocation7 + $0x18] sm:$0xff] %v1591_v44 }
 0x48d   :  { %v1629_v57 = vpop.f32.mrb[16].mxu1  ;;  %v1670_v58 = vpop.f32.mrb[20].mxu0 }
 0x48e   :  { %v1630_v60 = vadd.f32 %v1629_v57, %v1172_v53  ;;  %v1671_v59 = vadd.f32 %v1670_v58, %v1180_v54  ;;  %v1631_v61 = vpop.f32.mrb[17].mxu1  ;;  %v1672_v62 = vpop.f32.mrb[21].mxu0 }
 0x48f   :  { %v1632_v63 = vadd.f32 %v1631_v61, %v1176_v55  ;;  %v1673_v0 = vadd.f32 %v1672_v62, %v1184_v56  ;;  %v1633_v1 = vpop.f32.mrb[18].mxu1  ;;  %v1674_v2 = vpop.f32.mrb[22].mxu0 }
 0x490   :  { %1681 = vst [vmem:[#allocation7 + $0x20] sm:$0xff] %v1630_v60  ;;  %1683 = vst [vmem:[#allocation7 + $0x30] sm:$0xff] %v1671_v59  ;;  %v1634_v3 = vpop.f32.mrb[19].mxu1  ;;  %v1675_v4 = vpop.f32.mrb[23].mxu0 }
 0x491   :  { %1682 = vst [vmem:[#allocation7 + $0x28] sm:$0xff] %v1632_v63  ;;  %1684 = vst [vmem:[#allocation7 + $0x38] sm:$0xff] %v1673_v0 }
 0x492   :  { %2176 = shalt.err (!%p2173_p6)
}
 0x493   :  { %s2177_s21 = scalar_lea.hbm %s2444_s12, 1024 }
 0x494   :  { %p2178_p7 = scmp.ne.s32.totalorder %s2444_s12, %s2177_s21  ;;  %p2181_p8 = scmp.lt.u32.totalorder %s2177_s21, %s2444_s12 }
 0x496   :  { %p2183_p9 = pnand %p2181_p8, %p2178_p7 }
 0x498   :  { %2186 = shalt.err (!%p2183_p9)
}
 0x499   :  { %1694 = dma.vmem_to_hbm [thread:$0]  %s1692_s17, 1024, %s2444_s12, [#allocation4]  }
 0x49a   :  { %2191 = dma.done.wait [#allocation4], 1024  }
 0x49b   :  { %2192 = vsyncadd [#allocation4], 4294966272 }
 0x49c   :  { %1698 = vsyncpa [#allocation3], 1 }
 0x49d   :  { %1699 = vsyncpa [#allocation6], 1 }
 0x49e   :  { %1700 = vsyncpa [#allocation4], 1 }

</bundles_post_ra>
